<compile_context>
chip_gen: v7x
topology: tpu7x:2x2x1
jax: 0.10.0
libtpu: 0.0.40
codegen_flags: <defaults>
</compile_context>

<pallas_src>
import functools

import jax
import jax.numpy as jnp
from jax import lax
from jax.experimental import pallas as pl
from jax.experimental.pallas import tpu as pltpu

_ROW_TILE_CAP = 512                     # row tile for projection / fc+LN kernels
_ATTN_Q_TILE = 256                      # query-row tile for the attention kernel
_VMEM_LIMIT_BYTES = 48 * 1024 * 1024    # safe headroom on v5e/v6e (128 MiB) and v7x (64 MiB)
_MASK_NEG = -1e9                        # finite "masked" bias (avoids NaN on fully-masked rows)


def _row_tile(m):
    # block second-to-last dim must be divisible by 8 or equal the full dim
    return m if m <= _ROW_TILE_CAP else _ROW_TILE_CAP


def _cparams(dims):
    return pltpu.CompilerParams(dimension_semantics=dims,
                                vmem_limit_bytes=_VMEM_LIMIT_BYTES)


# --------------------------------------------------------------------------
# Kernel 1: tiled linear  y = x @ W + b   (also used for the packed QKV slab)
# --------------------------------------------------------------------------
def _linear_kernel(x_ref, w_ref, b_ref, o_ref):
    xb = x_ref[...].astype(jnp.bfloat16)               # cast in-VMEM, x read once
    acc = jnp.dot(xb, w_ref[...], preferred_element_type=jnp.float32) + b_ref[...]
    o_ref[...] = acc.astype(o_ref.dtype)


def linear(x2d, w_bf16, b, out_dtype=jnp.bfloat16):
    m, d_in = x2d.shape
    d_out = w_bf16.shape[1]
    tm = _row_tile(m)
    return pl.pallas_call(
        _linear_kernel,
        out_shape=jax.ShapeDtypeStruct((m, d_out), out_dtype),
        grid=(pl.cdiv(m, tm),),
        in_specs=[
            pl.BlockSpec((tm, d_in), lambda i: (i, 0)),
            pl.BlockSpec((d_in, d_out), lambda i: (0, 0)),   # weight resident
            pl.BlockSpec((1, d_out), lambda i: (0, 0)),      # bias resident
        ],
        out_specs=pl.BlockSpec((tm, d_out), lambda i: (i, 0)),
        compiler_params=_cparams(("parallel",)),
    )(x2d, w_bf16, b)


# --------------------------------------------------------------------------
# Kernel 1b: fused QKV projection with 3 outputs (fallback when the packed
# column-view path is not lane-aligned or d_k != d_v)
# --------------------------------------------------------------------------
def _qkv_split_kernel(x_ref, w_ref, b_ref, q_ref, k_ref, v_ref, *, wq, wk):
    xb = x_ref[...].astype(jnp.bfloat16)
    acc = jnp.dot(xb, w_ref[...], preferred_element_type=jnp.float32) + b_ref[...]
    q_ref[...] = acc[:, :wq].astype(q_ref.dtype)
    k_ref[...] = acc[:, wq:wq + wk].astype(k_ref.dtype)
    v_ref[...] = acc[:, wq + wk:].astype(v_ref.dtype)


def qkv_projection_split(x2d, w_qkv_bf16, b_qkv, *, wq, wk, wv):
    m, d_in = x2d.shape
    wtot = wq + wk + wv
    tm = _row_tile(m)
    kernel = functools.partial(_qkv_split_kernel, wq=wq, wk=wk)
    return pl.pallas_call(
        kernel,
        out_shape=(jax.ShapeDtypeStruct((m, wq), jnp.bfloat16),
                   jax.ShapeDtypeStruct((m, wk), jnp.bfloat16),
                   jax.ShapeDtypeStruct((m, wv), jnp.bfloat16)),
        grid=(pl.cdiv(m, tm),),
        in_specs=[
            pl.BlockSpec((tm, d_in), lambda i: (i, 0)),
            pl.BlockSpec((d_in, wtot), lambda i: (0, 0)),
            pl.BlockSpec((1, wtot), lambda i: (0, 0)),
        ],
        out_specs=(
            pl.BlockSpec((tm, wq), lambda i: (i, 0)),
            pl.BlockSpec((tm, wk), lambda i: (i, 0)),
            pl.BlockSpec((tm, wv), lambda i: (i, 0)),
        ),
        compiler_params=_cparams(("parallel",)),
    )(x2d, w_qkv_bf16, b_qkv)


# --------------------------------------------------------------------------
# Kernel 2: scaled dot-product attention, one (batch, q-tile) step, all heads
# --------------------------------------------------------------------------
def _attn_kernel(q_ref, k_ref, v_ref, mb_ref, out_ref, *maybe_attn,
                 n_head, d_k, d_v, with_attn):
    attn_ref = maybe_attn[0] if with_attn else None
    q = q_ref[0]          # (tq, H*dk) bf16 (softmax scale pre-folded into Wq/bq)
    k = k_ref[0]          # (Lk, H*dk) bf16
    v = v_ref[0]          # (Lk, H*dv) bf16
    mb = mb_ref[0]        # (1 or tq, Lk) f32 additive bias (0 / -1e9)

    for h in range(n_head):                    # small static head count -> unrolled
        qh = q[:, h * d_k:(h + 1) * d_k]
        kh = k[:, h * d_k:(h + 1) * d_k]
        vh = v[:, h * d_v:(h + 1) * d_v]

        # contract last dims directly (no explicit K transpose)
        s = lax.dot_general(qh, kh,
                            dimension_numbers=(((1,), (1,)), ((), ())),
                            preferred_element_type=jnp.float32)
        s = s + mb                             # key-bias broadcasts over query rows

        m = jnp.max(s, axis=-1, keepdims=True)
        e = jnp.exp(s - m)
        denom = jnp.sum(e, axis=-1, keepdims=True)
        p = e * pl.reciprocal(denom, approx=False)   # exact: probs sum to 1

        if with_attn:
            attn_ref[h, 0] = p.astype(attn_ref.dtype)        # bf16 store (half traffic)

        ctx = jnp.dot(p.astype(v.dtype), vh, preferred_element_type=jnp.float32)
        # direct per-head slice store (no concatenate / extra VMEM copy)
        out_ref[0, :, h * d_v:(h + 1) * d_v] = ctx.astype(out_ref.dtype)


def scaled_dot_product_attention(q3, k3, v3, mask_bias, *, n_head, d_k, d_v,
                                 col_blocks=(0, 0, 0), return_attn=True,
                                 attn_dtype=jnp.bfloat16):
    """q3/k3/v3 may be three column-offset views of one packed (B, L, 3*wq) array
    (selected via col_blocks = last-dim block indices) or three separate arrays."""
    # TODO(synk): for very long sequences, additionally tile over Lk with an
    # online-softmax accumulator; full (tq, Lk) rows are kept because the module
    # returns the attention weights.
    b, lq, _ = q3.shape
    _, lk, _ = k3.shape
    wq = n_head * d_k
    wv = n_head * d_v
    tq = lq if lq <= _ATTN_Q_TILE else _ATTN_Q_TILE
    mq = mask_bias.shape[1]                  # 1 (key-padding bias) or lq (full mask)
    tqm = 1 if mq == 1 else tq
    qc, kc, vc = col_blocks

    def q_map(c):
        return lambda i, j: (i, j, c)

    def kv_map(c):
        return lambda i, j: (i, 0, c)

    mask_map = (lambda i, j: (i, 0, 0)) if mq == 1 else (lambda i, j: (i, j, 0))

    kernel = functools.partial(_attn_kernel, n_head=n_head, d_k=d_k, d_v=d_v,
                               with_attn=return_attn)

    in_specs = [
        pl.BlockSpec((1, tq, wq), q_map(qc)),
        pl.BlockSpec((1, lk, wq), kv_map(kc)),
        pl.BlockSpec((1, lk, wv), kv_map(vc)),
        pl.BlockSpec((1, tqm, lk), mask_map),
    ]
    ctx_shape = jax.ShapeDtypeStruct((b, lq, wv), jnp.bfloat16)
    ctx_spec = pl.BlockSpec((1, tq, wv), lambda i, j: (i, j, 0))

    if return_attn:
        out_shape = (ctx_shape,
                     jax.ShapeDtypeStruct((n_head, b, lq, lk), attn_dtype))
        out_specs = (ctx_spec,
                     pl.BlockSpec((n_head, 1, tq, lk), lambda i, j: (0, i, j, 0)))
    else:
        out_shape = ctx_shape
        out_specs = ctx_spec

    res = pl.pallas_call(
        kernel,
        out_shape=out_shape,
        grid=(b, pl.cdiv(lq, tq)),
        in_specs=in_specs,
        out_specs=out_specs,
        compiler_params=_cparams(("parallel", "parallel")),
    )(q3, k3, v3, mask_bias)

    if return_attn:
        ctx, attn = res
        return ctx, attn
    return res, None


# --------------------------------------------------------------------------
# Kernel 3: fc projection + residual add + LayerNorm (dropout == identity)
# --------------------------------------------------------------------------
def _fc_ln_kernel(x_ref, w_ref, b_ref, res_ref, g_ref, beta_ref, o_ref, *, eps):
    y = jnp.dot(x_ref[...].astype(jnp.bfloat16), w_ref[...],
                preferred_element_type=jnp.float32)
    y = y + b_ref[...]
    # TODO(synk): dropout omitted (inference / eval semantics -> identity)
    y = y + res_ref[...]
    mean = jnp.mean(y, axis=-1, keepdims=True)
    var = jnp.mean(jnp.square(y - mean), axis=-1, keepdims=True)
    o_ref[...] = ((y - mean) * lax.rsqrt(var + eps) * g_ref[...]
                  + beta_ref[...]).astype(o_ref.dtype)


def fc_residual_layernorm(x2d, w_bf16, b, res2d, gamma, beta, eps=1e-5,
                          out_dtype=jnp.float32):
    m, d_in = x2d.shape
    d_out = w_bf16.shape[1]
    tm = _row_tile(m)
    kernel = functools.partial(_fc_ln_kernel, eps=eps)
    return pl.pallas_call(
        kernel,
        out_shape=jax.ShapeDtypeStruct((m, d_out), out_dtype),
        grid=(pl.cdiv(m, tm),),
        in_specs=[
            pl.BlockSpec((tm, d_in), lambda i: (i, 0)),
            pl.BlockSpec((d_in, d_out), lambda i: (0, 0)),   # fc weight resident
            pl.BlockSpec((1, d_out), lambda i: (0, 0)),
            pl.BlockSpec((tm, d_out), lambda i: (i, 0)),     # residual rows
            pl.BlockSpec((1, d_out), lambda i: (0, 0)),
            pl.BlockSpec((1, d_out), lambda i: (0, 0)),
        ],
        out_specs=pl.BlockSpec((tm, d_out), lambda i: (i, 0)),
        compiler_params=_cparams(("parallel",)),
    )(x2d, w_bf16, b, res2d, gamma, beta)


# --------------------------------------------------------------------------
# Full MultiHeadAttention forward
# --------------------------------------------------------------------------
def multi_head_attention(params, q, k, v, mask=None, *, n_head, d_k, d_v,
                         return_attn=True, attn_dtype=jnp.bfloat16,
                         out_dtype=jnp.float32):
    sz_b, len_q, d_model = q.shape
    _, len_k, _ = k.shape
    residual = q
    wq = n_head * d_k
    wv = n_head * d_v

    self_attn = (q is k) and (k is v)
    # packed column-view path needs equal head widths and 128-lane-aligned slices
    packed_ok = self_attn and (d_k == d_v) and (wq % 128 == 0)

    if packed_ok:
        # one matmul, one lane-dense packed store; attention reads q/k/v as
        # column-offset BlockSpec views of the packed slab (no extra copies)
        qkv = linear(q.reshape(sz_b * len_q, d_model),
                     params["w_qkv_bf16"], params["b_qkv"])
        qkv3 = qkv.reshape(sz_b, len_q, 3 * wq)
        q3 = k3 = v3 = qkv3
        col_blocks = (0, 1, 2)
        len_kv = len_q
    elif self_attn:
        q_p, k_p, v_p = qkv_projection_split(
            q.reshape(sz_b * len_q, d_model),
            params["w_qkv_bf16"], params["b_qkv"], wq=wq, wk=wq, wv=wv)
        q3 = q_p.reshape(sz_b, len_q, wq)
        k3 = k_p.reshape(sz_b, len_q, wq)
        v3 = v_p.reshape(sz_b, len_q, wv)
        col_blocks = (0, 0, 0)
        len_kv = len_q
    else:
        # TODO(synk): cross-attention K/V projections could also be fused (and the
        # projections folded into the attention kernel on v5e); kept separate here.
        q_p = linear(q.reshape(sz_b * len_q, d_model),
                     params["w_qs_scaled_bf16"], params["b_qs_scaled"])
        k_p = linear(k.reshape(sz_b * len_k, d_model),
                     params["w_ks_bf16"], params["b_ks"])
        v_p = linear(v.reshape(sz_b * len_k, d_model),
                     params["w_vs_bf16"], params["b_vs"])
        q3 = q_p.reshape(sz_b, len_q, wq)
        k3 = k_p.reshape(sz_b, len_k, wq)
        v3 = v_p.reshape(sz_b, len_k, wv)
        col_blocks = (0, 0, 0)
        len_kv = len_k

    # compact additive mask bias: (B, 1, Lk) for key-padding masks (FastSpeech
    # case), (B, Lq, Lk) only when a full 3-D mask is supplied
    if mask is None:
        mask_bias = jnp.zeros((sz_b, 1, len_kv), jnp.float32)
    elif mask.ndim == 2:
        mask_bias = jnp.where(mask != 0, _MASK_NEG, 0.0).astype(jnp.float32)[:, None, :]
    else:
        mask_bias = jnp.where(mask != 0, _MASK_NEG, 0.0).astype(jnp.float32)

    ctx, attn = scaled_dot_product_attention(
        q3, k3, v3, mask_bias, n_head=n_head, d_k=d_k, d_v=d_v,
        col_blocks=col_blocks, return_attn=return_attn, attn_dtype=attn_dtype)
    # ctx:  (B, Lq, H*d_v) bf16   -- already in the layout the fc expects
    # attn: (H, B, Lq, Lk)        -- head-major, reshape below is free

    out2d = fc_residual_layernorm(
        ctx.reshape(sz_b * len_q, wv),
        params["fc_w_bf16"], params["fc_b"],
        residual.reshape(sz_b * len_q, d_model),
        params["ln_g"], params["ln_b"], out_dtype=out_dtype)

    out = out2d.reshape(sz_b, len_q, d_model)
    if attn is not None:
        attn = attn.reshape(n_head * sz_b, len_q, len_kv)   # matches torch layout
    return out, attn


# --------------------------------------------------------------------------
# Deterministic parameter init (mirrors the module's __init__)
# --------------------------------------------------------------------------
def init_params(key, n_head, d_model, d_k, d_v):
    ks = jax.random.split(key, 8)
    std_qk = (2.0 / (d_model + d_k)) ** 0.5
    std_v = (2.0 / (d_model + d_v)) ** 0.5
    std_fc = (2.0 / (n_head * d_v + d_model)) ** 0.5   # xavier_normal for fc

    w_qs = jax.random.normal(ks[0], (n_head * d_k, d_model), jnp.float32) * std_qk
    w_ks = jax.random.normal(ks[1], (n_head * d_k, d_model), jnp.float32) * std_qk
    w_vs = jax.random.normal(ks[2], (n_head * d_v, d_model), jnp.float32) * std_v
    fc_w = jax.random.normal(ks[3], (d_model, n_head * d_v), jnp.float32) * std_fc

    def bias(kk, fan_in, n):
        bound = 1.0 / (fan_in ** 0.5)
        return jax.random.uniform(kk, (1, n), jnp.float32, -bound, bound)

    b_qs = bias(ks[4], d_model, n_head * d_k)
    b_ks = bias(ks[5], d_model, n_head * d_k)
    b_vs = bias(ks[6], d_model, n_head * d_v)
    fc_b = bias(ks[7], n_head * d_v, d_model)

    # fold the softmax 1/sqrt(d_k) scale into the f32 q weights/bias BEFORE the
    # bf16 cast (better precision, no per-element multiply in the kernel)
    scale = 1.0 / (float(d_k) ** 0.5)
    w_qs_s = w_qs * scale
    b_qs_s = b_qs * scale

    p = {
        # f32 originals (used only by the pure-JAX reference)
        "w_qs_t_f32": w_qs.T, "b_qs_f32": b_qs,
        "w_ks_t_f32": w_ks.T, "b_ks_f32": b_ks,
        "w_vs_t_f32": w_vs.T, "b_vs_f32": b_vs,
        "fc_w_t_f32": fc_w.T, "fc_b_f32": fc_b,
        # prepacked MXU-ready bf16 weights (biases stay f32 for the epilogues)
        "w_qs_scaled_bf16": w_qs_s.T.astype(jnp.bfloat16), "b_qs_scaled": b_qs_s,
        "w_ks_bf16": w_ks.T.astype(jnp.bfloat16), "b_ks": b_ks,
        "w_vs_bf16": w_vs.T.astype(jnp.bfloat16), "b_vs": b_vs,
        "w_qkv_bf16": jnp.concatenate([w_qs_s.T, w_ks.T, w_vs.T],
                                      axis=1).astype(jnp.bfloat16),
        "b_qkv": jnp.concatenate([b_qs_s, b_ks, b_vs], axis=1),
        "fc_w_bf16": fc_w.T.astype(jnp.bfloat16), "fc_b": fc_b,
        "ln_g": jnp.ones((1, d_model), jnp.float32),
        "ln_b": jnp.zeros((1, d_model), jnp.float32),
    }
    return p


# --------------------------------------------------------------------------
# Pure-JAX f32 reference (mirrors the PyTorch module, key-padding mask)
# --------------------------------------------------------------------------
def reference_mha(prm, q, k, v, key_mask, *, n_head, d_k, d_v, eps=1e-5):
    sz_b, len_q, d_model = q.shape
    _, len_k, _ = k.shape
    scale = 1.0 / (float(d_k) ** 0.5)
    qp = q @ prm["w_qs_t_f32"] + prm["b_qs_f32"]
    kp = k @ prm["w_ks_t_f32"] + prm["b_ks_f32"]
    vp = v @ prm["w_vs_t_f32"] + prm["b_vs_f32"]
    qh = qp.reshape(sz_b, len_q, n_head, d_k).transpose(2, 0, 1, 3)
    kh = kp.reshape(sz_b, len_k, n_head, d_k).transpose(2, 0, 1, 3)
    vh = vp.reshape(sz_b, len_k, n_head, d_v).transpose(2, 0, 1, 3)
    s = jnp.einsum("hbqd,hbkd->hbqk", qh, kh) * scale
    s = s + jnp.where(key_mask != 0, _MASK_NEG, 0.0)[None, :, None, :]
    p = jax.nn.softmax(s, axis=-1)
    ctx = jnp.einsum("hbqk,hbkd->hbqd", p, vh)
    ctx = ctx.transpose(1, 2, 0, 3).reshape(sz_b, len_q, n_head * d_v)
    y = ctx @ prm["fc_w_t_f32"] + prm["fc_b_f32"] + q
    mean = y.mean(-1, keepdims=True)
    var = ((y - mean) ** 2).mean(-1, keepdims=True)
    out = (y - mean) / jnp.sqrt(var + eps) * prm["ln_g"] + prm["ln_b"]
    return out, p.reshape(n_head * sz_b, len_q, len_k)


if __name__ == "__main__":
    # small shapes: batch=2, seq=8, d_model=128, n_head=2, d_k=d_v=64
    # (wq = n_head*d_k = 128 keeps the packed-QKV column views lane-aligned)
    B, L, D_MODEL, N_HEAD, D_K, D_V = 2, 8, 128, 2, 64, 64

    key = jax.random.PRNGKey(0)
    kp, kx, ke = jax.random.split(key, 3)
    params = init_params(kp, N_HEAD, D_MODEL, D_K, D_V)

    x = jax.random.normal(kx, (B, L, D_MODEL), jnp.float32)

    # key-padding mask: 1 == masked (batch 0: full length, batch 1: 6 valid keys)
    lengths = jnp.array([8, 6], dtype=jnp.int32)
    key_mask = (jnp.arange(L)[None, :] >= lengths[:, None]).astype(jnp.int32)  # (B, L)

    # --- self-attention (q = k = v), the FastSpeech usage --------------------
    out, attn = multi_head_attention(
        params, x, x, x, key_mask, n_head=N_HEAD, d_k=D_K, d_v=D_V)
    jax.block_until_ready((out, attn))
    assert out.shape == (B, L, D_MODEL)
    assert attn.shape == (N_HEAD * B, L, L)
    assert bool(jnp.all(jnp.isfinite(out)))
    assert bool(jnp.all(jnp.isfinite(attn.astype(jnp.float32))))

    out_ref, attn_ref = reference_mha(params, x, x, x, key_mask,
                                      n_head=N_HEAD, d_k=D_K, d_v=D_V)
    assert bool(jnp.allclose(out, out_ref, atol=0.15, rtol=0.1)), "self-attn out mismatch"
    assert bool(jnp.allclose(attn.astype(jnp.float32), attn_ref, atol=0.05)), \
        "self-attn probs mismatch"

    # --- cross-attention (separate projections) exercises the fallback path --
    enc = jax.random.normal(ke, (B, L, D_MODEL), jnp.float32)
    out_x, attn_x = multi_head_attention(
        params, x, enc, enc, key_mask, n_head=N_HEAD, d_k=D_K, d_v=D_V)
    jax.block_until_ready((out_x, attn_x))
    out_xr, attn_xr = reference_mha(params, x, enc, enc, key_mask,
                                    n_head=N_HEAD, d_k=D_K, d_v=D_V)
    assert bool(jnp.allclose(out_x, out_xr, atol=0.15, rtol=0.1)), "cross-attn out mismatch"
    assert bool(jnp.allclose(attn_x.astype(jnp.float32), attn_xr, atol=0.05)), \
        "cross-attn probs mismatch"

    print("KERNEL_OK")
</pallas_src>

<mosaic_0001>
module attributes {stable_mosaic.version = 11 : i64} {
  func.func @_linear_kernel(%arg0: i32, %arg1: memref<16x128xf32, #tpu.memory_space<vmem>>, %arg2: memref<128x384xbf16, #tpu.memory_space<vmem>>, %arg3: memref<1x384xf32, #tpu.memory_space<vmem>>, %arg4: memref<16x384xbf16, #tpu.memory_space<vmem>>) attributes {dimension_semantics = [#tpu.dimension_semantics<parallel>], iteration_bounds = array<i64: 1>, scalar_prefetch = 0 : i64, scratch_operands = 0 : i64, tpu.core_type = #tpu.core_type<tc>, window_params = [{transform_indices = @transform_0, window_bounds = array<i64: 16, 128>}, {pipeline_mode = #tpu.pipeline_mode<synchronous>, transform_indices = @transform_1, window_bounds = array<i64: 128, 384>}, {pipeline_mode = #tpu.pipeline_mode<synchronous>, transform_indices = @transform_2, window_bounds = array<i64: 1, 384>}, {transform_indices = @transform_3, window_bounds = array<i64: 16, 384>}]} {
    %c0 = arith.constant 0 : index
    %c0_0 = arith.constant 0 : index
    %0 = vector.load %arg1[%c0, %c0_0] : memref<16x128xf32, #tpu.memory_space<vmem>>, vector<16x128xf32>
    %1 = arith.truncf %0 : vector<16x128xf32> to vector<16x128xbf16>
    %c0_1 = arith.constant 0 : index
    %c0_2 = arith.constant 0 : index
    %2 = vector.load %arg2[%c0_1, %c0_2] : memref<128x384xbf16, #tpu.memory_space<vmem>>, vector<128x384xbf16>
    %cst = arith.constant dense<0.000000e+00> : vector<16x384xf32>
    %3 = tpu.matmul %1, %2, %cst {dimension_numbers = #tpu.dot_dimension_numbers<[1], [0], [0], [1], [0, 0, 1, 1], [], []>} : vector<16x128xbf16>, vector<128x384xbf16>, vector<16x384xf32> -> vector<16x384xf32>
    %c0_3 = arith.constant 0 : index
    %c0_4 = arith.constant 0 : index
    %4 = vector.load %arg3[%c0_3, %c0_4] : memref<1x384xf32, #tpu.memory_space<vmem>>, vector<1x384xf32>
    %5 = vector.broadcast %4 : vector<1x384xf32> to vector<16x384xf32>
    %6 = arith.addf %3, %5 : vector<16x384xf32>
    %7 = arith.truncf %6 : vector<16x384xf32> to vector<16x384xbf16>
    %c0_5 = arith.constant 0 : index
    %c0_6 = arith.constant 0 : index
    %8 = vector.load %arg4[%c0_5, %c0_6] : memref<16x384xbf16, #tpu.memory_space<vmem>>, vector<16x384xbf16>
    tpu.vector_store %arg4[%c0_5, %c0_6], %7 {strides = array<i32>} : memref<16x384xbf16, #tpu.memory_space<vmem>>, vector<16x384xbf16>,
    return
  }
  func.func @transform_0(%arg0: i32) -> (i32, i32) {
    %c0_i32 = arith.constant 0 : i32
    %c0_i32_0 = arith.constant 0 : i32
    return %arg0, %c0_i32 : i32, i32
  }
  func.func @transform_1(%arg0: i32) -> (i32, i32) {
    %c0_i32 = arith.constant 0 : i32
    %c0_i32_0 = arith.constant 0 : i32
    %c0_i32_1 = arith.constant 0 : i32
    return %c0_i32, %c0_i32_0 : i32, i32
  }
  func.func @transform_2(%arg0: i32) -> (i32, i32) {
    %c0_i32 = arith.constant 0 : i32
    %c0_i32_0 = arith.constant 0 : i32
    %c0_i32_1 = arith.constant 0 : i32
    return %c0_i32, %c0_i32_0 : i32, i32
  }
  func.func @transform_3(%arg0: i32) -> (i32, i32) {
    %c0_i32 = arith.constant 0 : i32
    %c0_i32_0 = arith.constant 0 : i32
    return %arg0, %c0_i32 : i32, i32
  }
}

</mosaic_0001>

<bundles_post_ra>
// kernel: tpu_custom_call.1
= control target key start
LH: loop header
LB: loop body
LE: loop exit
PB: predicated region body
PF: predicated region fallthrough
CT: control target
= control target key end

     0   :  { %8 = vsyncpa [#allocation3], 0  ;;  %s600_s0 = inlined_call_operand.hbm [shape: f32[16,128], index: 0, kind: input, shape index: {}]   ;;  %s601_s1 = inlined_call_operand.hbm [shape: bf16[128,384], index: 1, kind: input, shape index: {}]   ;;  %s602_s2 = inlined_call_operand.vmem [shape: f32[1,384], index: 2, kind: input, shape index: {}]   ;;  %s603_s3 = inlined_call_operand.hbm [shape: bf16[16,384], index: 3, kind: output, shape index: {}]  }
   0x1   :  { %9 = vsyncpa [#allocation6], 0 }
   0x2   :  { %10 = vsyncpa [#allocation4], 0  ;;  %s525_s12 = smov [#allocation2]   ;;  %s453_s16 = scalar_lea.hbm %s600_s0, 256 }
   0x3   :  { %s16_s13 = sshll.u32 %s525_s12, 4  ;;  %p454_p0 = scmp.ne.s32.totalorder %s600_s0, %s453_s16  ;;  %s17_s13 = int_to_ptr.vmem [resolvable:$true] %s16_s13 }
   0x4   :  { %p457_p1 = scmp.lt.u32.totalorder %s453_s16, %s600_s0 }
   0x6   :  { %p459_p2 = pnand %p457_p1, %p454_p0 }
   0x8   :  { %462 = shalt.err (!%p459_p2)
}
   0x9   :  { %s463_s21 = scalar_lea.vmem %s17_s13, 256  ;;  %p468_p4 = scmp.lt.s32.totalorder %s17_s13, %s17_s13 }
   0xa   :  { %p464_p3 = scmp.ne.s32.totalorder %s17_s13, %s463_s21  ;;  %p469_p5 = scmp.lt.s32.totalorder %s463_s21, %s463_s21 }
   0xc   :  { %p470_p6 = por %p469_p5, %p468_p4 }
   0xe   :  { %p471_p7 = pnand %p470_p6, %p464_p3 }
  0x10   :  { %474 = shalt.err (!%p471_p7)
}
  0x11   :  { %s526_s22 = smov 128   ;;  %s527_s23 = smov 8  }
  0x12   :  { %22 = dma.hbm_to_vmem [thread:$0]  %s600_s0, 256, %s17_s13, [#allocation3], %s526_s22, %s526_s22, %s527_s23  }
  0x13   :  { %s528_s26 = smov [#allocation5]   ;;  %s475_s30 = scalar_lea.hbm %s601_s1, 3072 }
  0x14   :  { %s28_s27 = sshll.u32 %s528_s26, 4  ;;  %p476_p8 = scmp.ne.s32.totalorder %s601_s1, %s475_s30  ;;  %s29_s27 = int_to_ptr.vmem [resolvable:$true] %s28_s27 }
  0x15   :  { %p479_p9 = scmp.lt.u32.totalorder %s475_s30, %s601_s1 }
  0x17   :  { %p481_p10 = pnand %p479_p9, %p476_p8 }
  0x19   :  { %484 = shalt.err (!%p481_p10)
}
  0x1a   :  { %s485_s8 = scalar_lea.vmem %s29_s27, 3072  ;;  %p490_p12 = scmp.lt.s32.totalorder %s29_s27, %s29_s27 }
  0x1b   :  { %p486_p11 = scmp.ne.s32.totalorder %s29_s27, %s485_s8  ;;  %p491_p13 = scmp.lt.s32.totalorder %s485_s8, %s485_s8 }
  0x1d   :  { %p492_p0 = por %p491_p13, %p490_p12 }
  0x1f   :  { %p493_p1 = pnand %p492_p0, %p486_p11 }
  0x21   :  { %496 = shalt.err (!%p493_p1)
}
  0x22   :  { %s529_s0 = smov 192   ;;  %s530_s9 = smov 12  }
  0x23   :  { %34 = dma.hbm_to_vmem [thread:$0]  %s601_s1, 3072, %s29_s27, [#allocation6], %s529_s0, %s529_s0, %s530_s9  }
  0x24   :  { %519 = dma.done.wait [#allocation3], 256  }
  0x25   :  { %520 = vsyncadd [#allocation3], 4294967040 }
  0x26   :  { %521 = dma.done.wait [#allocation6], 3072  }
  0x27   :  { %522 = vsyncadd [#allocation6], 4294964224  ;;  %v531_v0 = vmov 0.0   ;;  %vm532_vm0 = vmmov 0   ;;  %v533_v1 = vmov 0   ;;  %v44_v25 = vld [vmem:[#allocation2] sm:$0xff]  ;;  %v81_v29 = vlaneseq }
  0x28   :  { %391 = vmatprep.subr.bf16.mxu1 %v531_v0  ;;  %407 = vmatprep.mubr.msk.bf16.mxu1 %vm532_vm0, %v531_v0  ;;  %v421_v2 = vld [vmem:[#allocation5 + $0x4] ss:$12 sps:$4 sm:$0xff]   ;;  %v423_v3 = vld [vmem:[#allocation5 + $0x8] ss:$12 sps:$4 sm:$0xff]   ;;  %v424_v4 = vld [vmem:[#allocation5] ss:$12 sps:$4 sm:$0xff]  }
  0x29   :  { %256 = vmatprep.mubr.bf16.mxu0 %v533_v1  ;;  %224 = vmatprep.subr.bf16.mxu0 %v421_v2  ;;  %v425_v5 = vld [vmem:[#allocation5 + $0x1c] ss:$12 sps:$4 sm:$0xff]   ;;  %v427_v6 = vld [vmem:[#allocation5 + $0x20] ss:$12 sps:$4 sm:$0xff]   ;;  %v428_v7 = vld [vmem:[#allocation5 + $0x18] ss:$12 sps:$4 sm:$0xff]  }
  0x2a   :  { %392 = vmatpush3.bf16.msra.mxu1 %v423_v3  ;;  %225 = vmatpush1.bf16.msra.mxu0 %v424_v4  ;;  %v429_v8 = vld [vmem:[#allocation5 + $0x34] ss:$12 sps:$4 sm:$0xff]   ;;  %v431_v9 = vld [vmem:[#allocation5 + $0x38] ss:$12 sps:$4 sm:$0xff]   ;;  %v432_v10 = vld [vmem:[#allocation5 + $0x30] ss:$12 sps:$4 sm:$0xff]  }
  0x2b   :  { %393 = vmatprep.subr.bf16.mxu1 %v531_v0  ;;  %226 = vmatprep.subr.bf16.mxu0 %v425_v5  ;;  %v433_v11 = vld [vmem:[#allocation5 + $0x4c] ss:$12 sps:$4 sm:$0xff]   ;;  %v435_v12 = vld [vmem:[#allocation5 + $0x50] ss:$12 sps:$4 sm:$0xff]   ;;  %v436_v13 = vld [vmem:[#allocation5 + $0x48] ss:$12 sps:$4 sm:$0xff]  }
  0x2c   :  { %v437_v14 = vld [vmem:[#allocation5 + $0x64] ss:$12 sps:$4 sm:$0xff]   ;;  %v439_v15 = vld [vmem:[#allocation5 + $0x68] ss:$12 sps:$4 sm:$0xff]   ;;  %v440_v16 = vld [vmem:[#allocation5 + $0x60] ss:$12 sps:$4 sm:$0xff]  }
  0x2d   :  { %v441_v17 = vld [vmem:[#allocation5 + $0x7c] ss:$12 sps:$4 sm:$0xff]   ;;  %v443_v18 = vld [vmem:[#allocation5 + $0x80] ss:$12 sps:$4 sm:$0xff]   ;;  %v444_v19 = vld [vmem:[#allocation5 + $0x78] ss:$12 sps:$4 sm:$0xff]  }
  0x2e   :  { %394 = vmatpush3.bf16.msra.mxu1 %v427_v6  ;;  %227 = vmatpush1.bf16.msra.mxu0 %v428_v7  ;;  %v445_v20 = vld [vmem:[#allocation5 + $0x94] ss:$12 sps:$4 sm:$0xff]   ;;  %v447_v21 = vld [vmem:[#allocation5 + $0x98] ss:$12 sps:$4 sm:$0xff]   ;;  %v448_v22 = vld [vmem:[#allocation5 + $0x90] ss:$12 sps:$4 sm:$0xff]  }
  0x2f   :  { %395 = vmatprep.subr.bf16.mxu1 %v531_v0  ;;  %228 = vmatprep.subr.bf16.mxu0 %v429_v8  ;;  %v449_v23 = vld [vmem:[#allocation5 + $0xac] ss:$12 sps:$4 sm:$0xff]   ;;  %v451_v24 = vld [vmem:[#allocation5 + $0xb0] ss:$12 sps:$4 sm:$0xff]   ;;  %v452_v27 = vld [vmem:[#allocation5 + $0xa8] ss:$12 sps:$4 sm:$0xff]  }
  0x30   :  { %v45_v26 = vld [vmem:[#allocation2 + $0x8] sm:$0xff]  ;;  %v82_v30 = vshrl.u32 %v81_v29, 7  ;;  %v79_v32 = vld [vmem:[%s602_s2] sm:$0x7]  ;;  %s534_s2 = smov [#allocation7]  }
  0x31   :  { %v46_v28 = vpack.c.bf16 %v45_v26, %v44_v25  ;;  %s337_s13 = sshll.u32 %s534_s2, 4  ;;  %s338_s13 = int_to_ptr.vmem [resolvable:$true] %s337_s13 }
  0x32   :  { %396 = vmatpush3.bf16.msra.mxu1 %v431_v9  ;;  %229 = vmatpush1.bf16.msra.mxu0 %v432_v10  ;;  %v91_v31 = vsub.s32 2, %v82_v30  ;;  %v83_v33 = vsub.s32 0, %v82_v30  ;;  %v87_v34 = vsub.s32 1, %v82_v30  ;;  %s497_s14 = scalar_lea.vmem %s338_s13, 384  ;;  %p502_p3 = scmp.lt.s32.totalorder %s338_s13, %s338_s13 }
  0x33   :  { %397 = vmatprep.subr.bf16.mxu1 %v531_v0  ;;  %230 = vmatprep.subr.bf16.mxu0 %v433_v11  ;;  %p498_p2 = scmp.ne.s32.totalorder %s338_s13, %s497_s14  ;;  %p503_p4 = scmp.lt.s32.totalorder %s497_s14, %s497_s14 }
  0x34   :  { %v92_v35 = vrot.slane %v79_v32, %v91_v31  ;;  %v84_v36 = vrot.slane %v79_v32, %v83_v33  ;;  %v88_v37 = vrot.slane %v79_v32, %v87_v34 }
  0x35   :  { %p504_p5 = por %p503_p4, %p502_p3 }
  0x36   :  { %398 = vmatpush3.bf16.msra.mxu1 %v435_v12  ;;  %231 = vmatpush1.bf16.msra.mxu0 %v436_v13 }
  0x37   :  { %399 = vmatprep.subr.bf16.mxu1 %v531_v0  ;;  %232 = vmatprep.subr.bf16.mxu0 %v437_v14  ;;  %p505_p6 = pnand %p504_p5, %p498_p2 }
  0x3a   :  { %400 = vmatpush3.bf16.msra.mxu1 %v439_v15  ;;  %233 = vmatpush1.bf16.msra.mxu0 %v440_v16 }
  0x3b   :  { %401 = vmatprep.subr.bf16.mxu1 %v531_v0  ;;  %234 = vmatprep.subr.bf16.mxu0 %v441_v17 }
  0x3e   :  { %402 = vmatpush3.bf16.msra.mxu1 %v443_v18  ;;  %235 = vmatpush1.bf16.msra.mxu0 %v444_v19 }
  0x3f   :  { %403 = vmatprep.subr.bf16.mxu1 %v531_v0  ;;  %236 = vmatprep.subr.bf16.mxu0 %v445_v20 }
  0x42   :  { %404 = vmatpush3.bf16.msra.mxu1 %v447_v21  ;;  %237 = vmatpush1.bf16.msra.mxu0 %v448_v22 }
  0x43   :  { %405 = vmatprep.subr.bf16.mxu1 %v531_v0  ;;  %238 = vmatprep.subr.bf16.mxu0 %v449_v23 }
  0x46   :  { %406 = vmatpush3.bf16.msra.mxu1 %v451_v24  ;;  %239 = vmatpush1.bf16.msra.mxu0 %v452_v27 }
  0x49   :  { %408 = vmatmul.mubr.bf16.vlgmr.msra.gmra.mrb[0].mxu1 %v46_v28  ;;  %257 = vmatmul.mubr.bf16.vlgmr.msra.gmra.mrb[0].mxu0 %v46_v28 }
 0x11c   :  { %v301_v38 = vpop.f32.mrb[0].mxu1  ;;  %v258_v40 = vpop.f32.mrb[0].mxu0 }
 0x11d   :  { %v302_v39 = vadd.f32 %v301_v38, %v92_v35  ;;  %v409_v41 = vpop.f32.mrb[1].mxu1  ;;  %v259_v42 = vadd.f32 %v258_v40, %v84_v36  ;;  %v260_v43 = vpop.f32.mrb[1].mxu0 }
 0x11e   :  { %v304_v44 = vpop.f32.mrb[2].mxu1  ;;  %v261_v46 = vadd.f32 %v260_v43, %v88_v37  ;;  %v262_v48 = vpop.f32.mrb[2].mxu0 }
 0x11f   :  { %v379_v45 = vpack.c.bf16 %v302_v39, %v302_v39  ;;  %v305_v47 = vadd.f32 %v304_v44, %v92_v35  ;;  %v410_v49 = vpop.f32.mrb[3].mxu1  ;;  %v263_v50 = vadd.f32 %v262_v48, %v84_v36  ;;  %v264_v51 = vpop.f32.mrb[3].mxu0 }
 0x120   :  { %v378_v52 = vpack.c.bf16 %v261_v46, %v259_v42  ;;  %v265_v54 = vadd.f32 %v264_v51, %v88_v37 }
 0x121   :  { %329 = vst [vmem:[#allocation7 + $0x8] sm:$0xf] %v379_v45  ;;  %v381_v53 = vpack.c.bf16 %v305_v47, %v305_v47 }
 0x122   :  { %328 = vst [vmem:[#allocation7] sm:$0xff] %v378_v52  ;;  %v380_v55 = vpack.c.bf16 %v265_v54, %v263_v50 }
 0x123   :  { %331 = vst [vmem:[#allocation7 + $0x14] sm:$0xf] %v381_v53 }
 0x124   :  { %330 = vst [vmem:[#allocation7 + $0xc] sm:$0xff] %v380_v55 }
 0x125   :  { %508 = shalt.err (!%p505_p6)
}
 0x126   :  { %s509_s17 = scalar_lea.hbm %s603_s3, 384 }
 0x127   :  { %p510_p7 = scmp.ne.s32.totalorder %s603_s3, %s509_s17  ;;  %p513_p8 = scmp.lt.u32.totalorder %s509_s17, %s603_s3 }
 0x129   :  { %p515_p9 = pnand %p513_p8, %p510_p7 }
 0x12b   :  { %518 = shalt.err (!%p515_p9)
}
 0x12c   :  { %343 = dma.vmem_to_hbm [thread:$0]  %s338_s13, 384, %s603_s3, [#allocation4], %s529_s0, %s529_s0, %s530_s9  }
 0x12d   :  { %523 = dma.done.wait [#allocation4], 384  }
 0x12e   :  { %524 = vsyncadd [#allocation4], 4294966912 }
 0x12f   :  { %347 = vsyncpa [#allocation3], 1 }
 0x130   :  { %348 = vsyncpa [#allocation6], 1 }
 0x131   :  { %349 = vsyncpa [#allocation4], 1 }

</bundles_post_ra>
